<compile_context>
chip_gen: v5e
topology: v5e:2x2
jax: 0.10.0
libtpu: 0.0.40
codegen_flags: <defaults>
</compile_context>

<pallas_src>
import jax
import jax.numpy as jnp
from jax.experimental import pallas as pl
from jax.experimental.pallas import tpu as pltpu


def _conv3x3_prelu_kernel(xw_ref, w_ref, b_ref, a_ref, o_ref):
    # xw_ref: (TH+2, W+2, Cin)     bf16 padded input window (1-row halo each side)
    # w_ref : (3, 3*Cin, Cout_p)   bf16 weights, [dy, dx*Cin+ci, co]
    # b_ref : (1, Cout_p)          f32 bias
    # a_ref : (1, Cout_p)          f32 PReLU alpha expanded to pre-shuffle channels
    # o_ref : (TH, W, Cout_p)      f32 conv + bias + PReLU output (pre pixel-shuffle)
    TH, W, Cout_p = o_ref.shape
    Cin = xw_ref.shape[-1]

    xw = xw_ref[...]                                   # (TH+2, W+2, Cin) bf16
    # Gather the 3 horizontal taps once: concat along channels -> (TH+2, W, 3*Cin).
    xcat = jnp.concatenate(
        [xw[:, 0:W, :], xw[:, 1:W + 1, :], xw[:, 2:W + 2, :]], axis=-1)

    w_all = w_ref[...]                                 # (3, 3*Cin, Cout_p) bf16

    acc = jnp.zeros((TH * W, Cout_p), dtype=jnp.float32)
    # 3 MXU matmuls with K = 3*Cin (dy row-slices are outer-dim slices: free).
    for dy in range(3):
        lhs = xcat[dy:dy + TH].reshape(TH * W, 3 * Cin)      # lane dim untouched
        acc = acc + jnp.dot(lhs, w_all[dy],
                            preferred_element_type=jnp.float32)

    acc = acc + b_ref[...]                              # (1, Cout_p) broadcasts
    out = jnp.where(acc > 0, acc, acc * a_ref[...])     # PReLU (pre-shuffle channels)
    o_ref[...] = out.reshape(TH, W, Cout_p).astype(o_ref.dtype)


def upsample_block(x_nchw, weight, bias, alpha, up_scale, *, row_tile=None):
    """
    x_nchw : (N, Cin, H, W)  float32
    weight : (Cout, Cin, 3, 3)   with Cout = Cin * up_scale**2  (PyTorch OIHW)
    bias   : (Cout,)
    alpha  : (Cin,)              PReLU per-channel slope
    returns: (N, Cin, H*up_scale, W*up_scale)  float32
    """
    N, Cin, H, W = x_nchw.shape
    r = up_scale
    Cout = Cin * r * r
    assert weight.shape == (Cout, Cin, 3, 3)

    # Lane-dense output channels (multiple of 128); no-op for real SRGAN Cout=256.
    Cout_p = ((Cout + 127) // 128) * 128

    # Row-tile: largest divisor of H keeping the f32 output block <= ~2 MiB.
    if row_tile is None:
        budget = 2 * 1024 * 1024
        TH = 1
        for t in range(1, H + 1):
            if H % t == 0 and t * W * Cout_p * 4 <= budget:
                TH = t
    else:
        TH = row_tile
    assert H % TH == 0
    num_h = H // TH

    # NCHW -> NHWC, bf16 for the MXU, zero pad spatially by 1 (conv padding=1).
    x_nhwc = jnp.transpose(x_nchw, (0, 2, 3, 1)).astype(jnp.bfloat16)
    x_pad = jnp.pad(x_nhwc, ((0, 0), (1, 1), (1, 1), (0, 0)))
    # Overlapping row windows (1-row halo on each side): (N, num_h, TH+2, W+2, Cin).
    windows = jnp.stack(
        [x_pad[:, t * TH: t * TH + TH + 2] for t in range(num_h)], axis=1)

    # OIHW -> (dy, dx*Cin+ci, co) matching the in-kernel dx channel-concat order.
    w_hwio = jnp.transpose(weight, (2, 3, 1, 0))            # (3, 3, Cin, Cout)
    w3 = w_hwio.reshape(3, 3 * Cin, Cout).astype(jnp.bfloat16)
    b2 = bias.reshape(1, Cout).astype(jnp.float32)
    # PReLU alpha on pre-shuffle channels: alpha_pre[co] = alpha[co // r^2].
    alpha_pre = jnp.repeat(alpha, r * r).reshape(1, Cout).astype(jnp.float32)
    if Cout_p != Cout:
        pad = Cout_p - Cout
        w3 = jnp.pad(w3, ((0, 0), (0, 0), (0, pad)))
        b2 = jnp.pad(b2, ((0, 0), (0, pad)))
        alpha_pre = jnp.pad(alpha_pre, ((0, 0), (0, pad)))

    conv_out = pl.pallas_call(
        _conv3x3_prelu_kernel,
        out_shape=jax.ShapeDtypeStruct((N, H, W, Cout_p), jnp.float32),
        grid_spec=pltpu.PrefetchScalarGridSpec(
            num_scalar_prefetch=0,
            grid=(N, num_h),
            in_specs=[
                pl.BlockSpec((None, None, TH + 2, W + 2, Cin),
                             lambda n, h: (n, h, 0, 0, 0)),
                pl.BlockSpec((3, 3 * Cin, Cout_p), lambda n, h: (0, 0, 0)),
                pl.BlockSpec((1, Cout_p), lambda n, h: (0, 0)),
                pl.BlockSpec((1, Cout_p), lambda n, h: (0, 0)),
            ],
            out_specs=pl.BlockSpec((None, TH, W, Cout_p),
                                   lambda n, h: (n, h, 0, 0)),
        ),
        compiler_params=pltpu.CompilerParams(
            dimension_semantics=("parallel", "parallel")),
    )(windows, w3, b2, alpha_pre)

    # Drop lane padding, then PixelShuffle (pure permutation; PReLU already done).
    conv_out = conv_out[..., :Cout]                          # (N, H, W, Cin*r*r)
    y = conv_out.reshape(N, H, W, Cin, r, r)
    y = jnp.transpose(y, (0, 3, 1, 4, 2, 5))                 # (N, Cin, H, r, W, r)
    y = y.reshape(N, Cin, H * r, W * r)                      # NCHW output
    return y


def _reference(x_nchw, weight, bias, alpha, up_scale):
    """Plain-JAX reference (lax conv + pixel shuffle + PReLU), f32 HIGHEST precision."""
    N, Cin, H, W = x_nchw.shape
    r = up_scale
    out = jax.lax.conv_general_dilated(
        x_nchw, weight, window_strides=(1, 1), padding=((1, 1), (1, 1)),
        dimension_numbers=("NCHW", "OIHW", "NCHW"),
        precision=jax.lax.Precision.HIGHEST)
    out = out + bias.reshape(1, -1, 1, 1)
    out = out.reshape(N, Cin, r, r, H, W)
    out = jnp.transpose(out, (0, 1, 4, 2, 5, 3)).reshape(N, Cin, H * r, W * r)
    a = alpha.reshape(1, Cin, 1, 1)
    return jnp.where(out > 0, out, out * a)


if __name__ == "__main__":
    key = jax.random.PRNGKey(0)
    N, Cin, H, W = 2, 4, 16, 16
    up_scale = 2
    Cout = Cin * up_scale ** 2

    k_x, k_w, k_b = jax.random.split(key, 3)
    x = jax.random.normal(k_x, (N, Cin, H, W), dtype=jnp.float32)

    fan_in = Cin * 3 * 3
    bound = 1.0 / (fan_in ** 0.5)
    weight = jax.random.uniform(k_w, (Cout, Cin, 3, 3), jnp.float32,
                                minval=-bound, maxval=bound)
    bias = jax.random.uniform(k_b, (Cout,), jnp.float32,
                              minval=-bound, maxval=bound)
    alpha = jnp.full((Cin,), 0.25, dtype=jnp.float32)   # PyTorch PReLU default

    y = upsample_block(x, weight, bias, alpha, up_scale)
    y = jax.block_until_ready(y)

    # Reference with bf16-quantized matmul inputs (what the kernel actually
    # multiplies) so the comparison is tight despite bf16 MXU inputs.
    x_q = x.astype(jnp.bfloat16).astype(jnp.float32)
    w_q = weight.astype(jnp.bfloat16).astype(jnp.float32)
    y_ref = _reference(x_q, w_q, bias, alpha, up_scale)

    assert y.shape == (N, Cin, H * up_scale, W * up_scale)
    assert jnp.allclose(y, y_ref, rtol=1e-3, atol=1e-3)

    print("KERNEL_OK")
</pallas_src>

<mosaic_0001>
module attributes {stable_mosaic.version = 11 : i64} {
  func.func @_conv3x3_prelu_kernel(%arg0: i32, %arg1: i32, %arg2: memref<1x1x18x18x4xbf16, #tpu.memory_space<vmem>>, %arg3: memref<3x12x128xbf16, #tpu.memory_space<vmem>>, %arg4: memref<1x128xf32, #tpu.memory_space<vmem>>, %arg5: memref<1x128xf32, #tpu.memory_space<vmem>>, %arg6: memref<1x16x16x128xf32, #tpu.memory_space<vmem>>) attributes {dimension_semantics = [#tpu.dimension_semantics<parallel>, #tpu.dimension_semantics<parallel>], iteration_bounds = array<i64: 2, 1>, scalar_prefetch = 0 : i64, scratch_operands = 0 : i64, tpu.core_type = #tpu.core_type<tc>, window_params = [{transform_indices = @transform_0, window_bounds = array<i64: 1, 1, 18, 18, 4>}, {pipeline_mode = #tpu.pipeline_mode<synchronous>, transform_indices = @transform_1, window_bounds = array<i64: 3, 12, 128>}, {pipeline_mode = #tpu.pipeline_mode<synchronous>, transform_indices = @transform_2, window_bounds = array<i64: 1, 128>}, {pipeline_mode = #tpu.pipeline_mode<synchronous>, transform_indices = @transform_3, window_bounds = array<i64: 1, 128>}, {transform_indices = @transform_4, window_bounds = array<i64: 1, 16, 16, 128>}]} {
    %c0 = arith.constant 0 : index
    %c0_0 = arith.constant 0 : index
    %c0_1 = arith.constant 0 : index
    %c0_2 = arith.constant 0 : index
    %c0_3 = arith.constant 0 : index
    %0 = vector.load %arg2[%c0, %c0_0, %c0_1, %c0_2, %c0_3] : memref<1x1x18x18x4xbf16, #tpu.memory_space<vmem>>, vector<1x1x18x18x4xbf16>
    %1 = vector.shape_cast %0 : vector<1x1x18x18x4xbf16> to vector<18x18x4xbf16>
    %2 = vector.extract_strided_slice %1 {offsets = [0, 0, 0], sizes = [18, 16, 4], strides = [1, 1, 1]} : vector<18x18x4xbf16> to vector<18x16x4xbf16>
    %3 = vector.extract_strided_slice %1 {offsets = [0, 1, 0], sizes = [18, 16, 4], strides = [1, 1, 1]} : vector<18x18x4xbf16> to vector<18x16x4xbf16>
    %4 = vector.extract_strided_slice %1 {offsets = [0, 2, 0], sizes = [18, 16, 4], strides = [1, 1, 1]} : vector<18x18x4xbf16> to vector<18x16x4xbf16>
    %5 = tpu.concatenate %2, %3, %4 in 2 : vector<18x16x4xbf16>, vector<18x16x4xbf16>, vector<18x16x4xbf16> -> vector<18x16x12xbf16>
    %c0_4 = arith.constant 0 : index
    %c0_5 = arith.constant 0 : index
    %c0_6 = arith.constant 0 : index
    %6 = vector.load %arg3[%c0_4, %c0_5, %c0_6] : memref<3x12x128xbf16, #tpu.memory_space<vmem>>, vector<3x12x128xbf16>
    %cst = arith.constant 0.000000e+00 : f32
    %7 = vector.broadcast %cst : f32 to vector<256x128xf32>
    %8 = vector.extract_strided_slice %5 {offsets = [0, 0, 0], sizes = [16, 16, 12], strides = [1, 1, 1]} : vector<18x16x12xbf16> to vector<16x16x12xbf16>
    %9 = vector.shape_cast %8 : vector<16x16x12xbf16> to vector<256x12xbf16>
    %10 = vector.extract_strided_slice %6 {offsets = [0, 0, 0], sizes = [1, 12, 128], strides = [1, 1, 1]} : vector<3x12x128xbf16> to vector<1x12x128xbf16>
    %11 = vector.shape_cast %10 : vector<1x12x128xbf16> to vector<12x128xbf16>
    %cst_7 = arith.constant dense<0.000000e+00> : vector<256x128xf32>
    %12 = tpu.matmul %9, %11, %cst_7 {dimension_numbers = #tpu.dot_dimension_numbers<[1], [0], [0], [1], [0, 0, 1, 1], [], []>} : vector<256x12xbf16>, vector<12x128xbf16>, vector<256x128xf32> -> vector<256x128xf32>
    %13 = arith.addf %7, %12 : vector<256x128xf32>
    %14 = vector.extract_strided_slice %5 {offsets = [1, 0, 0], sizes = [16, 16, 12], strides = [1, 1, 1]} : vector<18x16x12xbf16> to vector<16x16x12xbf16>
    %15 = vector.shape_cast %14 : vector<16x16x12xbf16> to vector<256x12xbf16>
    %16 = vector.extract_strided_slice %6 {offsets = [1, 0, 0], sizes = [1, 12, 128], strides = [1, 1, 1]} : vector<3x12x128xbf16> to vector<1x12x128xbf16>
    %17 = vector.shape_cast %16 : vector<1x12x128xbf16> to vector<12x128xbf16>
    %cst_8 = arith.constant dense<0.000000e+00> : vector<256x128xf32>
    %18 = tpu.matmul %15, %17, %cst_8 {dimension_numbers = #tpu.dot_dimension_numbers<[1], [0], [0], [1], [0, 0, 1, 1], [], []>} : vector<256x12xbf16>, vector<12x128xbf16>, vector<256x128xf32> -> vector<256x128xf32>
    %19 = arith.addf %13, %18 : vector<256x128xf32>
    %20 = vector.extract_strided_slice %5 {offsets = [2, 0, 0], sizes = [16, 16, 12], strides = [1, 1, 1]} : vector<18x16x12xbf16> to vector<16x16x12xbf16>
    %21 = vector.shape_cast %20 : vector<16x16x12xbf16> to vector<256x12xbf16>
    %22 = vector.extract_strided_slice %6 {offsets = [2, 0, 0], sizes = [1, 12, 128], strides = [1, 1, 1]} : vector<3x12x128xbf16> to vector<1x12x128xbf16>
    %23 = vector.shape_cast %22 : vector<1x12x128xbf16> to vector<12x128xbf16>
    %cst_9 = arith.constant dense<0.000000e+00> : vector<256x128xf32>
    %24 = tpu.matmul %21, %23, %cst_9 {dimension_numbers = #tpu.dot_dimension_numbers<[1], [0], [0], [1], [0, 0, 1, 1], [], []>} : vector<256x12xbf16>, vector<12x128xbf16>, vector<256x128xf32> -> vector<256x128xf32>
    %25 = arith.addf %19, %24 : vector<256x128xf32>
    %c0_10 = arith.constant 0 : index
    %c0_11 = arith.constant 0 : index
    %26 = vector.load %arg4[%c0_10, %c0_11] : memref<1x128xf32, #tpu.memory_space<vmem>>, vector<1x128xf32>
    %27 = vector.broadcast %26 : vector<1x128xf32> to vector<256x128xf32>
    %28 = arith.addf %25, %27 : vector<256x128xf32>
    %cst_12 = arith.constant 0.000000e+00 : f32
    %29 = vector.broadcast %cst_12 : f32 to vector<256x128xf32>
    %30 = arith.cmpf ogt, %28, %29 : vector<256x128xf32>
    %c0_13 = arith.constant 0 : index
    %c0_14 = arith.constant 0 : index
    %31 = vector.load %arg5[%c0_13, %c0_14] : memref<1x128xf32, #tpu.memory_space<vmem>>, vector<1x128xf32>
    %32 = vector.broadcast %31 : vector<1x128xf32> to vector<256x128xf32>
    %33 = arith.mulf %28, %32 : vector<256x128xf32>
    %34 = arith.select %30, %28, %33 : vector<256x128xi1>, vector<256x128xf32>
    %35 = vector.shape_cast %34 : vector<256x128xf32> to vector<16x16x128xf32>
    %c0_15 = arith.constant 0 : index
    %c0_16 = arith.constant 0 : index
    %c0_17 = arith.constant 0 : index
    %c0_18 = arith.constant 0 : index
    %36 = vector.load %arg6[%c0_15, %c0_16, %c0_17, %c0_18] : memref<1x16x16x128xf32, #tpu.memory_space<vmem>>, vector<1x16x16x128xf32>
    %37 = vector.shape_cast %36 : vector<1x16x16x128xf32> to vector<16x16x128xf32>
    %38 = vector.shape_cast %35 : vector<16x16x128xf32> to vector<1x16x16x128xf32>
    tpu.vector_store %arg6[%c0_15, %c0_16, %c0_17, %c0_18], %38 {strides = array<i32>} : memref<1x16x16x128xf32, #tpu.memory_space<vmem>>, vector<1x16x16x128xf32>,
    return
  }
  func.func @transform_0(%arg0: i32, %arg1: i32) -> (i32, i32, i32, i32, i32) {
    %c0_i32 = arith.constant 0 : i32
    %c0_i32_0 = arith.constant 0 : i32
    %c0_i32_1 = arith.constant 0 : i32
    %c0_i32_2 = arith.constant 0 : i32
    return %arg0, %arg1, %c0_i32, %c0_i32_0, %c0_i32_1 : i32, i32, i32, i32, i32
  }
  func.func @transform_1(%arg0: i32, %arg1: i32) -> (i32, i32, i32) {
    %c0_i32 = arith.constant 0 : i32
    %c0_i32_0 = arith.constant 0 : i32
    %c0_i32_1 = arith.constant 0 : i32
    %c0_i32_2 = arith.constant 0 : i32
    return %c0_i32, %c0_i32_0, %c0_i32_1 : i32, i32, i32
  }
  func.func @transform_2(%arg0: i32, %arg1: i32) -> (i32, i32) {
    %c0_i32 = arith.constant 0 : i32
    %c0_i32_0 = arith.constant 0 : i32
    %c0_i32_1 = arith.constant 0 : i32
    return %c0_i32, %c0_i32_0 : i32, i32
  }
  func.func @transform_3(%arg0: i32, %arg1: i32) -> (i32, i32) {
    %c0_i32 = arith.constant 0 : i32
    %c0_i32_0 = arith.constant 0 : i32
    %c0_i32_1 = arith.constant 0 : i32
    return %c0_i32, %c0_i32_0 : i32, i32
  }
  func.func @transform_4(%arg0: i32, %arg1: i32) -> (i32, i32, i32, i32) {
    %c0_i32 = arith.constant 0 : i32
    %c0_i32_0 = arith.constant 0 : i32
    %c0_i32_1 = arith.constant 0 : i32
    return %arg0, %arg1, %c0_i32, %c0_i32_0 : i32, i32, i32, i32
  }
}

</mosaic_0001>

<bundles_post_ra>
// kernel: tpu_custom_call.1
= control target key start
LH: loop header
LB: loop body
LE: loop exit
PB: predicated region body
PF: predicated region fallthrough
CT: control target
= control target key end

     0   :  { %9 = vsyncpa [#allocation3], 0  ;;  %s2445_s0 = inlined_call_operand.vmem [shape: bf16[2,1,18,18,4], index: 0, kind: input, shape index: {}]   ;;  %s2446_s1 = inlined_call_operand.vmem [shape: bf16[3,12,128], index: 1, kind: input, shape index: {}]   ;;  %s2447_s2 = inlined_call_operand.vmem [shape: f32[1,128], index: 2, kind: input, shape index: {}]   ;;  %s2448_s3 = inlined_call_operand.vmem [shape: f32[1,128], index: 3, kind: input, shape index: {}]   ;;  %s2449_s4 = inlined_call_operand.hbm [shape: f32[2,16,16,128], index: 4, kind: output, shape index: {}]  }
   0x1   :  { %11 = vsyncpa [#allocation3 + $0x1], 0  ;;  %s1816_s15 = smov 0   ;;  %s1818_s16 = smov 0  }
   0x2   :  { %s1820_s17 = smov 0   ;;  %s1822_s18 = smov 0  }
   0x3   :  { %s1824_s19 = smov 0   ;;  %s1826_s20 = smov 0  }
   0x4 LB: > { %s1478_s21 = sadd.s32 4294967295, %s1786_s20   ;;  %s1479_s22 = sadd.s32 4294967294, %s1786_s20   ;;  %s1786_s20 = sphi %s1826_s20, %s17_s20   ;;  %s1782_s19 = sphi %s1824_s19, %s2456_s19   ;;  %s1778_s18 = sphi %s1822_s18, %s2455_s18   ;;  %s1774_s17 = sphi %s1820_s17, %s2454_s17   ;;  %s1770_s16 = sphi %s1818_s16, %s2453_s16   ;;  %s1766_s15 = sphi %s1816_s15, %s2452_s15  }
   0x5   : > { %s29_s23 = sadd.s32 1, %s1782_s19  ;;  %s129_s24 = sadd.s32 1, %s1774_s17 }
   0x6   : > { %p31_p0 = scmp.ge.s32.totalorder %s29_s23, 2  ;;  %p139_p1 = scmp.ne.s32.totalorder %s1774_s17, %s1770_s16 }
   0x7   : > { %p140_p2 = scmp.eq.s32.totalorder %s1478_s21, 1  ;;  %p145_p3 = scmp.ne.s32.totalorder %s1770_s16, %s1766_s15 }
   0x8   : > { %s2458_s23 = smov (%p31_p0, %s29_s23), 0  ;;  %p146_p5 = scmp.eq.s32.totalorder %s1479_s22, 1 }
   0x9   : > { %p1856_p4 = por %p140_p2, %p139_p1  ;;  %s124_s26 = ssub.s32 %s1782_s19, %s2458_s23 }
   0xa   : > { %p1482_p6 = scmp.ge.s32.totalorder %s1786_s20, 1  ;;  %p127_p7 = scmp.eq.s32.totalorder %s124_s26, 0 }
   0xb   : > { %p1863_p8 = por %p146_p5, %p145_p3  ;;  %p185_p9 = scmp.lt.s32.totalorder %s1786_s20, 3 }
   0xc   : > { %s1869_s28 = scalar_select %p127_p7, %s1774_s17, %s129_s24  }
   0xd   : > { %p186_p10 = pnand %p1482_p6, %p185_p9 }
   0xe   : > { %p215_p11 = scmp.lt.s32.totalorder (!%p186_p10), %s1778_s18, 1  ;;  %s1788_s8 = smov (!%p186_p10), 8  }
   0xf   : > { %189 = sbr.rel (%p186_p10) target bundleno = 490 (0x1ea), region = 36  ;;  %s1789_s9 = smov (!%p186_p10), 4  }
  0x10   : > { %s212_s6 = sand.u32 (!%p186_p10), 1, %s1770_s16   ;;  %s1643_s14 = sshll.u32 (!%p186_p10), %s1778_s18, 8 }
  0x11   : > { %s1483_s12 = sshll.u32 (!%p186_p10), %s212_s6, 8  ;;  %s1392_s24 = scalar_lea.hbm (!%p186_p10), %s2449_s4, %s1643_s14 }
  0x12   : > { %s2242_s13 = scalar_lea.vmem (!%p186_p10), [#allocation2], %s1483_s12  ;;  %s1395_s26 = sshll.u32 (!%p186_p10), %s1392_s24, 4  ;;  %s1396_s26 = int_to_ptr.hbm [resolvable:$true] %s1395_s26 }
  0x13   : > { %s1728_s10 = scalar_lea.hbm (!%p186_p10), %s2449_s4, 512 }
  0x14   : > { %s216_s29 = scalar_select %p215_p11, %s1778_s18, 1  ;;  %vm677_vm0 = vcmask 1046528   ;;  %vm424_vm1 = vsmask.f32 7424  ;;  %vm886_vm2 = vcmask 1045504   ;;  %vm768_vm3 = vcmask 31744  }
  0x15   : > { %vm805_vm4 = vcmask 64512   ;;  %vm853_vm5 = vcmask 97280   ;;  %s1393_s18 = sshll.u32 %s2242_s13, 4  ;;  %s1394_s18 = int_to_ptr.vmem [resolvable:$true] %s1393_s18 }
  0x16   : > { %s1647_s30 = smul.u32 216, %s216_s29  ;;  %s1378_s29 = scalar_lea.sflag [#allocation3], %s212_s6 }
  0x18   : > { %s1876_s7 = scalar_lea.vmem %s2445_s0, %s1647_s30  ;;  %s1722_s30 = sshra.s32 %s1396_s26, 4  ;;  %s1723_s30 = int_to_ptr.hbm [resolvable:$true] %s1722_s30 }
  0x19   : > { %v1879_v0 = vld [vmem:[%s1876_s7 + $0x18] sm:$0xff]  ;;  %v234_v1 = vld [vmem:[%s1876_s7 + $0x20] sm:$0x1]  ;;  %v267_v4 = vld [vmem:[%s1876_s7 + $0xa4] sm:$0x1]  ;;  %s1724_s5 = scalar_lea.hbm %s1723_s30, 256  ;;  %p1729_p1 = scmp.lt.s32.totalorder %s1723_s30, %s2449_s4 }
  0x1a   : > { %v1883_v2 = vld [vmem:[%s1876_s7 + $0x9c] sm:$0xff]  ;;  %v390_v3 = vunpack.c.l.b16 %v234_v1  ;;  %v450_v5 = vshrl.u32 %v1879_v0, 16  ;;  %v452_v6 = vshll.u32 %v1879_v0, 16  ;;  %v401_v7 = vunpack.c.l.b16 %v267_v4  ;;  %v228_v11 = vld [vmem:[%s1876_s7 + $0x8] sm:$0x1]  ;;  %v1907_v38 = vld [vmem:[%s1876_s7 + $0xc] sm:$0xff]  ;;  %p1725_p12 = scmp.ne.s32.totalorder %s1723_s30, %s1724_s5  ;;  %p1730_p2 = scmp.lt.s32.totalorder %s1728_s10, %s1724_s5 }
  0x1b   : > { %v684_v9 = vrot.slane %v1879_v0, 1  ;;  %v584_v10 = vshll.u32 %v1883_v2, 16  ;;  %v582_v17 = vshrl.u32 %v1883_v2, 16  ;;  %v231_v18 = vld [vmem:[%s1876_s7 + $0x14] sm:$0x1]  ;;  %v388_v19 = vunpack.c.l.b16 %v228_v11  ;;  %v1899_v28 = vld [vmem:[%s1876_s7] sm:$0xff] }
  0x1c   : > { %v408_v8 = vpack.c.b16 %v390_v3, %v390_v3  ;;  %v454_v12 = vrot.slane %v452_v6, 1  ;;  %v419_v13 = vpack.c.b16 %v401_v7, %v401_v7  ;;  %v717_v25 = vrot.slane %v1883_v2, 1  ;;  %v237_v32 = vld [vmem:[%s1876_s7 + $0x2c] sm:$0x1]  ;;  %v270_v33 = vld [vmem:[%s1876_s7 + $0xb0] sm:$0x1]  ;;  %p1726_p13 = pnand %p1725_p12, %p1856_p4  ;;  %p1731_p3 = por %p1730_p2, %p1729_p1 }
  0x1d   : > { %v586_v22 = vrot.slane %v584_v10, 1  ;;  %v389_v27 = vunpack.c.l.b16 %v231_v18  ;;  %v406_v29 = vpack.c.b16 %v388_v19, %v388_v19  ;;  %v426_v34 = vshrl.u32 %v1899_v28, 16  ;;  %v1911_v44 = vld [vmem:[%s1876_s7 + $0xa8] sm:$0xff]  ;;  %v273_v57 = vld [vmem:[%s1876_s7 + $0xbc] sm:$0x1]  ;;  %v1932_v4 = vld [vmem:[%s1876_s7 + $0xb4] sm:$0xff] }
  0x1e   : > { %v685_v14 = vrot.slane %v408_v8, 1  ;;  %v457_v15 = vshll.u32 %v408_v8, 16  ;;  %v455_v16 = vor.u32 %v454_v12, %v450_v5  ;;  %v589_v23 = vshll.u32 %v419_v13, 16  ;;  %v1920_v54 = vld [vmem:[%s1876_s7 + $0x24] sm:$0xff]  ;;  %v240_v61 = vld [vmem:[%s1876_s7 + $0x38] sm:$0x1]  ;;  %p1727_p0 = pneg %p1726_p13 }
  0x1f   : > { %v718_v26 = vrot.slane %v419_v13, 1  ;;  %v587_v30 = vor.u32 %v586_v22, %v582_v17  ;;  %v428_v35 = vshll.u32 %v1899_v28, 16  ;;  %v433_v36 = vshll.u32 %v406_v29, 16  ;;  %v1939_v12 = vld [vmem:[%s1876_s7 + $0x30] sm:$0xff] }
  0x20   : > { %v686_v20 = vsel %vm677_vm0, %v684_v9, %v685_v14  ;;  %v459_v21 = vrot.slane %v457_v15, 1  ;;  %v591_v31 = vrot.slane %v589_v23, 1  ;;  %v407_v39 = vpack.c.b16 %v389_v27, %v389_v27  ;;  %p1732_p5 = pnand %p1731_p3, %p1727_p0 }
  0x21   : > { %736 = vrot.lane.b32.xlu1 %v686_v20, %s1788_s8  ;;  %v719_v37 = vsel %vm677_vm0, %v717_v25, %v718_v26  ;;  %v430_v40 = vrot.slane %v428_v35, 1  ;;  %v435_v41 = vrot.slane %v433_v36, 1  ;;  %v391_v43 = vunpack.c.l.b16 %v237_v32  ;;  %v243_v20 = vld [vmem:[%s1876_s7 + $0x44] sm:$0x1]  ;;  %v1952_v32 = vld [vmem:[%s1876_s7 + $0x3c] sm:$0xff] }
  0x22   : > { %v460_v24 = vsel %vm424_vm1, %v455_v16, %v459_v21  ;;  %v592_v42 = vsel %vm424_vm1, %v587_v30, %v591_v31  ;;  %v402_v45 = vunpack.c.l.b16 %v270_v33  ;;  %v438_v47 = vshrl.u32 %v1907_v38, 16 }
  0x23   : > { %645 = vrot.lane.b32.xlu0 %v460_v24, %s1789_s9  ;;  %v431_v46 = vor.u32 %v430_v40, %v426_v34  ;;  %v440_v48 = vshll.u32 %v1907_v38, 16  ;;  %v681_v49 = vrot.slane %v1907_v38, 1  ;;  %v682_v50 = vrot.slane %v407_v39, 1 }
  0x24   : > { %v445_v51 = vshll.u32 %v407_v39, 16  ;;  %v678_v52 = vrot.slane %v1899_v28, 1  ;;  %v679_v53 = vrot.slane %v406_v29, 1  ;;  %v409_v58 = vpack.c.b16 %v391_v43, %v391_v43 }
  0x25   : > { %v436_v55 = vsel %vm424_vm1, %v431_v46, %v435_v41  ;;  %v442_v56 = vrot.slane %v440_v48, 1  ;;  %v1924_v59 = vpack.c.b16 %v402_v45, %v402_v45  ;;  %v596_v60 = vshll.u32 %v1911_v44, 16 }
  0x26   : > { %641 = vrot.lane.b32.xlu2 %v436_v55, %s1789_s9  ;;  %v447_v63 = vrot.slane %v445_v51, 1  ;;  %v464_v1 = vshll.u32 %v1920_v54, 16  ;;  %v683_v3 = vsel %vm677_vm0, %v681_v49, %v682_v50  ;;  %v403_v5 = vunpack.c.l.b16 %v273_v57 }
  0x27   : > { %v443_v62 = vor.u32 %v442_v56, %v438_v47  ;;  %v680_v6 = vsel %vm677_vm0, %v678_v52, %v679_v53  ;;  %v687_v7 = vrot.slane %v1920_v54, 1  ;;  %v594_v8 = vshrl.u32 %v1911_v44, 16  ;;  %v276_v53 = vld [vmem:[%s1876_s7 + $0xc8] sm:$0x1] }
  0x28   : > { %v688_v9 = vrot.slane %v409_v58, 1  ;;  %v598_v10 = vrot.slane %v596_v60, 1  ;;  %v601_v11 = vshll.u32 %v1924_v59, 16  ;;  %v392_v13 = vunpack.c.l.b16 %v240_v61 }
  0x29   : > { %758 = vrot.lane.b32.xlu1 %v719_v37, %s1788_s8  ;;  %v448_v14 = vsel %vm424_vm1, %v443_v62, %v447_v63  ;;  %v462_v15 = vshrl.u32 %v1920_v54, 16  ;;  %v466_v16 = vrot.slane %v464_v1, 1  ;;  %v469_v17 = vshll.u32 %v409_v58, 16 }
  0x2a   : > { %v421_v18 = vpack.c.b16 %v403_v5, %v403_v5  ;;  %v608_v19 = vshll.u32 %v1932_v4, 16  ;;  %v599_v21 = vor.u32 %v598_v10, %v594_v8  ;;  %v603_v22 = vrot.slane %v601_v11, 1  ;;  %v246_v8 = vld [vmem:[%s1876_s7 + $0x50] sm:$0x1] }
  0x2b   : > { %667 = vrot.lane.b32.xlu0 %v592_v42, %s1789_s9  ;;  %v410_v23 = vpack.c.b16 %v392_v13, %v392_v13  ;;  %v476_v24 = vshll.u32 %v1939_v12, 16  ;;  %v689_v25 = vsel %vm677_vm0, %v687_v7, %v688_v9  ;;  %v467_v26 = vor.u32 %v466_v16, %v462_v15  ;;  %v1982_v10 = vld [vmem:[%s1876_s7 + $0x90] sm:$0xff] }
  0x2c   : > { %v471_v27 = vrot.slane %v469_v17, 1  ;;  %v606_v29 = vshrl.u32 %v1932_v4, 16  ;;  %v610_v30 = vrot.slane %v608_v19, 1  ;;  %v613_v31 = vshll.u32 %v421_v18, 16 }
  0x2d   : > { %v393_v33 = vunpack.c.l.b16 %v243_v20  ;;  %v604_v34 = vsel %vm424_vm1, %v599_v21, %v603_v22  ;;  %v474_v35 = vshrl.u32 %v1939_v12, 16  ;;  %v478_v36 = vrot.slane %v476_v24, 1  ;;  %v1991_v22 = vld [vmem:[%s1876_s7 + $0x48] sm:$0xff] }
  0x2e   : > { %643 = vrot.lane.b32.xlu2 %v448_v14, %s1789_s9  ;;  %v481_v37 = vshll.u32 %v410_v23, 16  ;;  %v472_v39 = vsel %vm424_vm1, %v467_v26, %v471_v27  ;;  %v611_v40 = vor.u32 %v610_v30, %v606_v29  ;;  %v615_v41 = vrot.slane %v613_v31, 1  ;;  %v249_v27 = vld [vmem:[%s1876_s7 + $0x5c] sm:$0x1] }
  0x2f   : > { %v411_v42 = vpack.c.b16 %v393_v33, %v393_v33  ;;  %v488_v43 = vshll.u32 %v1952_v32, 16  ;;  %v479_v45 = vor.u32 %v478_v36, %v474_v35  ;;  %v720_v47 = vrot.slane %v1911_v44, 1 }
  0x30   : > { %v483_v46 = vrot.slane %v481_v37, 1  ;;  %v721_v48 = vrot.slane %v1924_v59, 1  ;;  %v616_v49 = vsel %vm424_vm1, %v611_v40, %v615_v41  ;;  %v486_v50 = vshrl.u32 %v1952_v32, 16  ;;  %v1971_v59 = vld [vmem:[%s1876_s7 + $0xc0] sm:$0xff]  ;;  %v2001_v37 = vld [vmem:[%s1876_s7 + $0x54] sm:$0xff] }
  0x31   : > { %734 = vrot.lane.b32.xlu1 %v683_v3, %s1788_s8  ;;  %v490_v51 = vrot.slane %v488_v43, 1  ;;  %v493_v52 = vshll.u32 %v411_v42, 16  ;;  %v404_v60 = vunpack.c.l.b16 %v276_v53  ;;  %v723_v61 = vrot.slane %v1932_v4, 1  ;;  %v264_v3 = vld [vmem:[%s1876_s7 + $0x98] sm:$0x1] }
  0x32   : > { %v484_v55 = vsel %vm424_vm1, %v479_v45, %v483_v46  ;;  %v722_v56 = vsel %vm677_vm0, %v720_v47, %v721_v48  ;;  %v724_v62 = vrot.slane %v421_v18, 1  ;;  %v690_v63 = vrot.slane %v1939_v12, 1 }
  0x33   : > { %732 = vrot.lane.b32.xlu0 %v680_v6, %s1788_s8  ;;  %v491_v57 = vor.u32 %v490_v51, %v486_v50  ;;  %v495_v58 = vrot.slane %v493_v52, 1  ;;  %v691_v1 = vrot.slane %v410_v23, 1  ;;  %v620_v5 = vshll.u32 %v1971_v59, 16 }
  0x34   : > { %v422_v7 = vpack.c.b16 %v404_v60, %v404_v60  ;;  %v725_v9 = vsel %vm677_vm0, %v723_v61, %v724_v62  ;;  %v400_v11 = vunpack.c.l.b16 %v264_v3  ;;  %v618_v14 = vshrl.u32 %v1971_v59, 16  ;;  %v252_v61 = vld [vmem:[%s1876_s7 + $0x68] sm:$0x1] }
  0x35   : > { %v496_v6 = vsel %vm424_vm1, %v491_v57, %v495_v58  ;;  %v692_v13 = vsel %vm677_vm0, %v690_v63, %v691_v1  ;;  %v622_v15 = vrot.slane %v620_v5, 1  ;;  %v726_v17 = vrot.slane %v1971_v59, 1 }
  0x36   : > { %647 = vrot.lane.b32.xlu2 %v472_v39, %s1789_s9  ;;  %v625_v16 = vshll.u32 %v422_v7, 16  ;;  %v727_v18 = vrot.slane %v422_v7, 1  ;;  %v394_v19 = vunpack.c.l.b16 %v246_v8  ;;  %v693_v20 = vrot.slane %v1952_v32, 1 }
  0x37   : > { %v694_v21 = vrot.slane %v411_v42, 1  ;;  %v418_v23 = vpack.c.b16 %v400_v11, %v400_v11  ;;  %v572_v24 = vshll.u32 %v1982_v10, 16  ;;  %v500_v29 = vshll.u32 %v1991_v22, 16  ;;  %v2023_v11 = vld [vmem:[%s1876_s7 + $0x60] sm:$0xff] }
  0x38   : > { %v627_v26 = vrot.slane %v625_v16, 1  ;;  %v728_v30 = vsel %vm677_vm0, %v726_v17, %v727_v18  ;;  %v412_v31 = vpack.c.b16 %v394_v19, %v394_v19  ;;  %v395_v39 = vunpack.c.l.b16 %v249_v27  ;;  %v255_v18 = vld [vmem:[%s1876_s7 + $0x74] sm:$0x1]  ;;  %v2034_v19 = vld [vmem:[%s1876_s7 + $0x6c] sm:$0xff] }
  0x39   : > { %738 = vrot.lane.b32.xlu1 %v689_v25, %s1788_s8  ;;  %v623_v25 = vor.u32 %v622_v15, %v618_v14  ;;  %v695_v33 = vsel %vm677_vm0, %v693_v20, %v694_v21  ;;  %v574_v35 = vrot.slane %v572_v24, 1  ;;  %v577_v36 = vshll.u32 %v418_v23, 16  ;;  %v1599_v21 = vld [vmem:[%s2446_s1 + $0x10] sm:$0xf] }
  0x3a   : > { %v498_v41 = vshrl.u32 %v1991_v22, 16  ;;  %v502_v42 = vrot.slane %v500_v29, 1  ;;  %v505_v43 = vshll.u32 %v412_v31, 16  ;;  %v696_v45 = vrot.slane %v1991_v22, 1 }
  0x3b   : > { %669 = vrot.lane.b32.xlu0 %v604_v34, %s1789_s9  ;;  %v570_v34 = vshrl.u32 %v1982_v10, 16  ;;  %v628_v40 = vsel %vm424_vm1, %v623_v25, %v627_v26  ;;  %v697_v46 = vrot.slane %v412_v31, 1  ;;  %v579_v48 = vrot.slane %v577_v36, 1  ;;  %v1559_v36 = vld [vmem:[%s2446_s1 + $0x8] sm:$0xf] }
  0x3c   : > { %v512_v50 = vshll.u32 %v2001_v37, 16  ;;  %v503_v51 = vor.u32 %v502_v42, %v498_v41  ;;  %v507_v52 = vrot.slane %v505_v43, 1  ;;  %v699_v62 = vrot.slane %v2001_v37, 1 }
  0x3d   : > { %v575_v47 = vor.u32 %v574_v35, %v570_v34  ;;  %v698_v53 = vsel %vm677_vm0, %v696_v45, %v697_v46  ;;  %v396_v5 = vunpack.c.l.b16 %v252_v61  ;;  %v715_v7 = vrot.slane %v418_v23, 1  ;;  %v1642_v23 = vld [vmem:[%s2446_s1 + $0x10] sm:$0x30] }
  0x3e   : > { %760 = vrot.lane.b32.xlu2 %v722_v56, %s1788_s8  ;;  %v510_v56 = vshrl.u32 %v2001_v37, 16  ;;  %v514_v57 = vrot.slane %v512_v50, 1  ;;  %v508_v60 = vsel %vm424_vm1, %v503_v51, %v507_v52  ;;  %v702_v15 = vrot.slane %v2023_v11, 1  ;;  %v2062_v51 = vld [vmem:[%s1876_s7 + $0x78] sm:$0xff] }
  0x3f   : > { %v397_v20 = vunpack.c.l.b16 %v255_v18  ;;  %v536_v25 = vshll.u32 %v2034_v19, 16  ;;  %v1600_v26 = vor.u32 %v1642_v23, %v1599_v21  ;;  %v534_v27 = vshrl.u32 %v2034_v19, 16 }
  0x40   : > { %v515_v1 = vor.u32 %v514_v57, %v510_v56  ;;  %v522_v42 = vshrl.u32 %v2023_v11, 16  ;;  %v546_v61 = vshrl.u32 %v2062_v51, 16 }
  0x41   : > { %671 = vrot.lane.b32.xlu1 %v616_v49, %s1789_s9  ;;  %v413_v49 = vpack.c.b16 %v395_v39, %v395_v39  ;;  %v415_v24 = vpack.c.b16 %v397_v20, %v397_v20  ;;  %v538_v29 = vrot.slane %v536_v25, 1  ;;  %v1641_v39 = vld [vmem:[%s2446_s1 + $0x8] sm:$0x30]  ;;  %v2084_v20 = vld [vmem:[%s1876_s7 + $0x84] sm:$0xff] }
  0x42   : > { %v1560_v41 = vor.u32 %v1641_v39, %v1559_v36 }
  0x43   : > { %649 = vrot.lane.b32.xlu0 %v484_v55, %s1789_s9  ;;  %v580_v55 = vsel %vm424_vm1, %v575_v47, %v579_v48  ;;  %v517_v58 = vshll.u32 %v413_v49, 16  ;;  %v700_v63 = vrot.slane %v413_v49, 1  ;;  %v541_v31 = vshll.u32 %v415_v24, 16  ;;  %v258_v49 = vld [vmem:[%s1876_s7 + $0x80] sm:$0x1] }
  0x44   : > { %v888_v46 = vsel %vm886_vm2, %v1560_v41, 0  ;;  %v398_v52 = vunpack.c.l.b16 %v258_v49 }
  0x45   : > { %v519_v3 = vrot.slane %v517_v58, 1  ;;  %v701_v8 = vsel %vm677_vm0, %v699_v62, %v700_v63  ;;  %v543_v34 = vrot.slane %v541_v31, 1  ;;  %1644 = vmatpush.bf16.msra.mxu3 %v888_v46  ;;  %897 = vmatpush.bf16.msra.mxu0 %v888_v46  ;;  %v548_v58 = vshll.u32 %v2062_v51, 16 }
  0x46   : > { %740 = vrot.lane.b32.xlu2 %v692_v13, %s1788_s8  ;;  %v414_v13 = vpack.c.b16 %v396_v5, %v396_v5  ;;  %v416_v57 = vpack.c.b16 %v398_v52, %v398_v52  ;;  %v708_v5 = vrot.slane %v2062_v51, 1  ;;  %v558_v46 = vshrl.u32 %v2084_v20, 16 }
  0x47   : > { %v550_v62 = vrot.slane %v548_v58, 1  ;;  %v2129_v58 = vld [vmem:[%s1876_s7 + $0xcc] sm:$0xff] }
  0x48   : > { %v703_v16 = vrot.slane %v414_v13, 1  ;;  %v529_v45 = vshll.u32 %v414_v13, 16  ;;  %v553_v63 = vshll.u32 %v416_v57, 16  ;;  %v705_v13 = vrot.slane %v2034_v19, 1 }
  0x49   : > { %651 = vrot.lane.b32.xlu1 %v496_v6, %s1789_s9  ;;  %v714_v6 = vrot.slane %v1982_v10, 1 }
  0x4a   : > { %v704_v17 = vsel %vm677_vm0, %v702_v15, %v703_v16  ;;  %v531_v48 = vrot.slane %v529_v45, 1  ;;  %v261_v16 = vld [vmem:[%s1876_s7 + $0x8c] sm:$0x1] }
  0x4b   : > { %762 = vrot.lane.b32.xlu0 %v725_v9, %s1788_s8  ;;  %v520_v9 = vsel %vm424_vm1, %v515_v1, %v519_v3  ;;  %v716_v14 = vsel %vm677_vm0, %v714_v6, %v715_v7  ;;  %v551_v1 = vor.u32 %v550_v62, %v546_v61  ;;  %v555_v3 = vrot.slane %v553_v63, 1 }
  0x4c   : > { %v709_v6 = vrot.slane %v416_v57, 1  ;;  %v279_v57 = vld [vmem:[%s1876_s7 + $0xd4] sm:$0x1]  ;;  %v632_v62 = vshll.u32 %v2129_v58, 16 }
  0x4d   : > { %v556_v7 = vsel %vm424_vm1, %v551_v1, %v555_v3  ;;  %v630_v1 = vshrl.u32 %v2129_v58, 16 }
  0x4e   : > { %673 = vrot.lane.b32.xlu2 %v628_v40, %s1789_s9  ;;  %v524_v40 = vshll.u32 %v2023_v11, 16  ;;  %v634_v3 = vrot.slane %v632_v62, 1 }
  0x50   : > { %v526_v43 = vrot.slane %v524_v40, 1 }
  0x51   : > { %764 = vrot.lane.b32.xlu1 %v728_v30, %s1788_s8  ;;  %v2045_v30 = vsel %vm886_vm2, %v1600_v26, 0  ;;  %v711_v26 = vrot.slane %v2084_v20, 1 }
  0x52   : > { %1095 = vmatpush.bf16.msra.mxu2 %v2045_v30  ;;  %v527_v47 = vor.u32 %v526_v43, %v522_v42 }
  0x53   : > { %742 = vrot.lane.b32.xlu0 %v695_v33, %s1788_s8  ;;  %v539_v33 = vor.u32 %v538_v29, %v534_v27 }
  0x54   : > { %v532_v50 = vsel %vm424_vm1, %v527_v47, %v531_v48 }
  0x55   : > { %v544_v35 = vsel %vm424_vm1, %v539_v33, %v543_v34 }
  0x56   : > { %653 = vrot.lane.b32.xlu2 %v508_v60, %s1789_s9 }
  0x59   : > { %744 = vrot.lane.b32.xlu1 %v698_v53, %s1788_s8  ;;  %v1579_v53 = vld [vmem:[%s2446_s1] sm:$0xf] }
  0x5b   : > { %665 = vrot.lane.b32.xlu0 %v580_v55, %s1789_s9  ;;  %v1640_v55 = vld [vmem:[%s2446_s1] sm:$0x30] }
  0x5c   : > { %v1580_v56 = vor.u32 %v1640_v55, %v1579_v53 }
  0x5e   : > { %756 = vrot.lane.b32.xlu2 %v716_v14, %s1788_s8  ;;  %v987_v60 = vsel %vm886_vm2, %v1580_v56, 0  ;;  %v706_v14 = vrot.slane %v415_v24, 1 }
  0x5f   : > { %1645 = vmatpush.bf16.msrb.mxu3 %v987_v60  ;;  %996 = vmatpush.bf16.msra.mxu1 %v987_v60  ;;  %v405_v60 = vunpack.c.l.b16 %v279_v57 }
  0x60   : > { %v707_v15 = vsel %vm677_vm0, %v705_v13, %v706_v14 }
  0x61   : > { %746 = vrot.lane.b32.xlu1 %v701_v8, %s1788_s8  ;;  %v710_v8 = vsel %vm677_vm0, %v708_v5, %v709_v6  ;;  %v423_v61 = vpack.c.b16 %v405_v60, %v405_v60  ;;  %v2226_v60 = vld [vmem:[%s2448_s3] ss:$0 sm:$0xff] }
  0x63   : > { %655 = vrot.lane.b32.xlu0 %v520_v9, %s1789_s9  ;;  %v637_v5 = vshll.u32 %v423_v61, 16 }
  0x66   : > { %657 = vrot.lane.b32.xlu2 %v532_v50, %s1789_s9 }
  0x69   : > { %659 = vrot.lane.b32.xlu1 %v544_v35, %s1789_s9 }
  0x6b   : > { %748 = vrot.lane.b32.xlu0 %v704_v17, %s1788_s8  ;;  %v399_v17 = vunpack.c.l.b16 %v261_v16 }
  0x6d   : > { %v417_v21 = vpack.c.b16 %v399_v17, %v399_v17 }
  0x6e   : > { %750 = vrot.lane.b32.xlu2 %v707_v15, %s1788_s8 }
  0x6f   : > { %v712_v24 = vrot.slane %v417_v21, 1  ;;  %v565_v48 = vshll.u32 %v417_v21, 16 }
  0x71   : > { %752 = vrot.lane.b32.xlu1 %v710_v8, %s1788_s8  ;;  %v713_v31 = vsel %vm677_vm0, %v711_v26, %v712_v24  ;;  %v567_v53 = vrot.slane %v565_v48, 1  ;;  %v635_v8 = vor.u32 %v634_v3, %v630_v1 }
  0x73   : > { %661 = vrot.lane.b32.xlu0 %v556_v7, %s1789_s9 }
  0x7b   : > { %754 = vrot.lane.b32.xlu0 %v713_v31, %s1788_s8  ;;  %v730_v31 = vrot.slane %v423_v61, 1 }
  0x80   : > { %v642_v9 = vpop.permute.xlu2 %641 }
  0x81   : > { %v770_v42 = vsel %vm768_vm3, %v1899_v28, %v642_v9  ;;  %v639_v9 = vrot.slane %v637_v5, 1 }
  0x83   : > { %v640_v14 = vsel %vm424_vm1, %v635_v8, %v639_v9 }
  0x84   : > { %675 = vrot.lane.b32.xlu1 %v640_v14, %s1789_s9 }
  0x88   : > { %v644_v29 = vpop.permute.xlu2 %643 }
  0x89   : > { %v772_v36 = vsel %vm768_vm3, %v1907_v38, %v644_v29  ;;  %v560_v38 = vshll.u32 %v2084_v20, 16 }
  0x8b   : > { %v562_v47 = vrot.slane %v560_v38, 1 }
  0x8d   : > { %v563_v52 = vor.u32 %v562_v47, %v558_v46 }
  0x8f   : > { %v568_v56 = vsel %vm424_vm1, %v563_v52, %v567_v53 }
  0x90   : > { %v648_v39 = vpop.permute.xlu2 %647  ;;  %663 = vrot.lane.b32.xlu2 %v568_v56, %s1789_s9 }
  0x91   : > { %v776_v45 = vsel %vm768_vm3, %v1920_v54, %v648_v39 }
  0x93   : > { %v737_v18 = vpop.permute.xlu1 %736 }
  0x95   : > { %v646_v23 = vpop.permute.xlu0 %645 }
  0x96   : > { %v774_v25 = vsel %vm768_vm3, %v1879_v0, %v646_v23 }
  0x97   : > { %v2090_v27 = vsel %vm805_vm4, %v774_v25, %v737_v18 }
  0x98   : > { %1601 = vmatmul.msk.bf16.vlgmr.msra.gmra.mxu2 %vm853_vm5, %v2090_v27  ;;  %v761_v49 = vpop.permute.xlu2 %760 }
  0x9b   : > { %v759_v33 = vpop.permute.xlu1 %758 }
  0x9d   : > { %v668_v34 = vpop.permute.xlu0 %667 }
  0x9e   : > { %v796_v35 = vsel %vm768_vm3, %v1883_v2, %v668_v34 }
  0x9f   : > { %v2099_v0 = vsel %vm805_vm4, %v796_v35, %v759_v33 }
  0xa0   : > { %1573 = vmatmul.msk.bf16.vlgmr.msra.gmra.mxu3 %vm853_vm5, %v2099_v0  ;;  %v741_v7 = vpop.permute.xlu2 %740 }
  0xa1   : > { %1646 = vmatpush.bf16.msra.mxu3 %v2045_v30 }
  0xa3   : > { %v735_v40 = vpop.permute.xlu1 %734 }
  0xa4   : > { %v809_v41 = vsel %vm805_vm4, %v772_v36, %v735_v40 }
  0xa5   : > { %v733_v43 = vpop.permute.xlu0 %732  ;;  %1561 = vmatmul.msk.bf16.vlgmr.msra.gmra.mxu0 %vm853_vm5, %v809_v41 }
  0xa6   : > { %v807_v2 = vsel %vm805_vm4, %v770_v42, %v733_v43 }
  0xa7   : > { %1581 = vmatmul.msk.bf16.vlgmr.msra.gmra.mxu1 %vm853_vm5, %v807_v2 }
  0xa8   : > { %v674_v18 = vpop.permute.xlu2 %673 }
  0xa9   : > { %v802_v25 = vsel %vm768_vm3, %v1971_v59, %v674_v18 }
  0xab   : > { %v739_v30 = vpop.permute.xlu1 %738 }
  0xac   : > { %v813_v28 = vsel %vm805_vm4, %v776_v45, %v739_v30 }
  0xad   : > { %v670_v50 = vpop.permute.xlu0 %669  ;;  %1602 = vmatmul.msk.bf16.gmra.mxu2 %vm853_vm5, %v813_v28 }
  0xae   : > { %v798_v54 = vsel %vm768_vm3, %v1911_v44, %v670_v50 }
  0xaf   : > { %v2121_v55 = vsel %vm805_vm4, %v798_v54, %v761_v49 }
  0xb0   : > { %1574 = vmatmul.msk.bf16.gmra.mxu3 %vm853_vm5, %v2121_v55  ;;  %v654_v29 = vpop.permute.xlu2 %653 }
  0xb1   : > { %v782_v59 = vsel %vm768_vm3, %v1991_v22, %v654_v29 }
  0xb3   : > { %v672_v63 = vpop.permute.xlu1 %671 }
  0xb4   : > { %v800_v15 = vsel %vm768_vm3, %v1932_v4, %v672_v63 }
  0xb5   : > { %1562 = vmatmul.msk.bf16.gmra.mxu0 %vm853_vm5, %v2090_v27  ;;  %v650_v44 = vpop.permute.xlu0 %649 }
  0xb6   : > { %v778_v6 = vsel %vm768_vm3, %v1939_v12, %v650_v44 }
  0xb7   : > { %1582 = vmatmul.msk.bf16.gmra.mxu1 %vm853_vm5, %v809_v41  ;;  %v815_v13 = vsel %vm805_vm4, %v778_v6, %v741_v7 }
  0xb8   : > { %v757_v39 = vpop.permute.xlu2 %756 }
  0xbb   : > { %v652_v12 = vpop.permute.xlu1 %651 }
  0xbc   : > { %v780_v21 = vsel %vm768_vm3, %v1952_v32, %v652_v12  ;;  %v729_v32 = vrot.slane %v2129_v58, 1 }
  0xbd   : > { %1603 = vmatmul.msk.bf16.gmra.mxu2 %vm853_vm5, %v815_v13  ;;  %v763_v16 = vpop.permute.xlu0 %762 }
  0xbe   : > { %v2145_v17 = vsel %vm805_vm4, %v800_v15, %v763_v16 }
  0xc0   : > { %1575 = vmatmul.msk.bf16.gmra.mxu3 %vm853_vm5, %v2145_v17  ;;  %v658_v43 = vpop.permute.xlu2 %657 }
  0xc1   : > { %v786_v2 = vsel %vm768_vm3, %v2023_v11, %v658_v43 }
  0xc3   : > { %v765_v26 = vpop.permute.xlu1 %764 }
  0xc4   : > { %v2159_v24 = vsel %vm805_vm4, %v802_v25, %v765_v26 }
  0xc5   : > { %1563 = vmatmul.msk.bf16.gmra.mxu0 %vm853_vm5, %v813_v28  ;;  %v743_v4 = vpop.permute.xlu0 %742 }
  0xc6   : > { %v817_v23 = vsel %vm805_vm4, %v780_v21, %v743_v4 }
  0xc7   : > { %1583 = vmatmul.msk.bf16.gmra.mxu1 %vm853_vm5, %v2090_v27  ;;  %v731_v27 = vsel %vm677_vm0, %v729_v32, %v730_v31 }
  0xc8   : > { %766 = vrot.lane.b32.xlu2 %v731_v27, %s1788_s8  ;;  %v751_v46 = vpop.permute.xlu2 %750 }
  0xcb   : > { %v745_v33 = vpop.permute.xlu1 %744 }
  0xcc   : > { %v819_v36 = vsel %vm805_vm4, %v782_v59, %v745_v33 }
  0xcd   : > { %1604 = vmatmul.msk.bf16.gmra.mxu2 %vm853_vm5, %v817_v23  ;;  %v666_v34 = vpop.permute.xlu0 %665 }
  0xce   : > { %v794_v35 = vsel %vm768_vm3, %v1982_v10, %v666_v34 }
  0xcf   : > { %v2175_v40 = vsel %vm805_vm4, %v794_v35, %v757_v39 }
  0xd0   : > { %1576 = vmatmul.msk.bf16.gmra.mxu3 %vm853_vm5, %v2159_v24 }
  0xd3   : > { %v747_v10 = vpop.permute.xlu1 %746 }
  0xd5   : > { %1564 = vmatmul.msk.bf16.gmra.mxu0 %vm853_vm5, %v815_v13  ;;  %v656_v41 = vpop.permute.xlu0 %655 }
  0xd6   : > { %v784_v22 = vsel %vm768_vm3, %v2001_v37, %v656_v41 }
  0xd7   : > { %1584 = vmatmul.msk.bf16.gmra.mxu1 %vm853_vm5, %v813_v28  ;;  %v821_v42 = vsel %vm805_vm4, %v784_v22, %v747_v10 }
  0xdb   : > { %v660_v37 = vpop.permute.xlu1 %659 }
  0xdc   : > { %v788_v30 = vsel %vm768_vm3, %v2034_v19, %v660_v37 }
  0xdd   : > { %1605 = vmatmul.msk.bf16.gmra.mxu2 %vm853_vm5, %v819_v36  ;;  %v749_v45 = vpop.permute.xlu0 %748  ;;  %v825_v47 = vsel %vm805_vm4, %v788_v30, %v751_v46 }
  0xde   : > { %v823_v38 = vsel %vm805_vm4, %v786_v2, %v749_v45 }
  0xe0   : > { %1593 = vmatmul.msk.bf16.vlgmr.msrb.gmra.mxu3 %vm853_vm5, %v2175_v40 }
  0xe3   : > { %v753_v28 = vpop.permute.xlu1 %752 }
  0xe5   : > { %1565 = vmatmul.msk.bf16.gmra.mxu0 %vm853_vm5, %v817_v23  ;;  %v662_v11 = vpop.permute.xlu0 %661 }
  0xe6   : > { %v790_v48 = vsel %vm768_vm3, %v2062_v51, %v662_v11  ;;  %v2220_v51 = vld [vmem:[%s2447_s2] ss:$0 sm:$0xff] }
  0xe7   : > { %1585 = vmatmul.msk.bf16.gmra.mxu1 %vm853_vm5, %v815_v13  ;;  %v2208_v19 = vsel %vm805_vm4, %v790_v48, %v753_v28 }
  0xea   : > { %v664_v54 = vpop.permute.xlu2 %663 }
  0xed   : > { %1606 = vmatmul.msk.bf16.gmra.mxu2 %vm853_vm5, %v821_v42  ;;  %v755_v61 = vpop.permute.xlu0 %754 }
  0xf0   : > { %1594 = vmatmul.msk.bf16.gmra.mxu3 %vm853_vm5, %v2099_v0 }
  0xf5   : > { %1566 = vmatmul.msk.bf16.gmra.mxu0 %vm853_vm5, %v819_v36 }
  0xf7   : > { %1586 = vmatmul.msk.bf16.gmra.mxu1 %vm853_vm5, %v817_v23 }
  0xfd   : > { %1607 = vmatmul.msk.bf16.gmra.mxu2 %vm853_vm5, %v823_v38 }
 0x100   : > { %1595 = vmatmul.msk.bf16.gmra.mxu3 %vm853_vm5, %v2121_v55 }
 0x105   : > { %1567 = vmatmul.msk.bf16.gmra.mxu0 %vm853_vm5, %v821_v42 }
 0x107   : > { %1587 = vmatmul.msk.bf16.gmra.mxu1 %vm853_vm5, %v819_v36 }
 0x10d   : > { %1608 = vmatmul.msk.bf16.gmra.mxu2 %vm853_vm5, %v825_v47 }
 0x110   : > { %1596 = vmatmul.msk.bf16.gmra.mxu3 %vm853_vm5, %v2145_v17 }
 0x115   : > { %1568 = vmatmul.msk.bf16.gmra.mxu0 %vm853_vm5, %v823_v38 }
 0x117   : > { %1588 = vmatmul.msk.bf16.gmra.mxu1 %vm853_vm5, %v821_v42 }
 0x11b   : > { %v1097_v49 = vpop.f32.mrf.mxu2 }
 0x11d   : > { %1609 = vmatmul.msk.bf16.gmra.mxu2 %vm853_vm5, %v2208_v19 }
 0x120   : > { %1613 = vmatmul.msk.bf16.vlgmr.msra.gmra.mxu3 %vm853_vm5, %v2121_v55  ;;  %v792_v55 = vsel %vm768_vm3, %v2084_v20, %v664_v54 }
 0x121   : > { %v2235_v1 = vsel %vm805_vm4, %v792_v55, %v755_v61 }
 0x122   : > { %v899_v50 = vpop.f32.mrf.mxu0  ;;  %v767_v37 = vpop.permute.xlu2 %766 }
 0x123   : > { %v2214_v52 = vpop.f32.mrf.mxu3  ;;  %v1099_v62 = vpop.f32.mrf.mxu2 }
 0x124   : > { %v998_v53 = vpop.f32.mrf.mxu1 }
 0x125   : > { %v999_v56 = vadd.f32 %v998_v53, %v899_v50  ;;  %1569 = vmatmul.msk.bf16.gmra.mxu0 %vm853_vm5, %v825_v47 }
 0x127   : > { %v1177_v57 = vadd.f32 %v1097_v49, %v999_v56  ;;  %1589 = vmatmul.msk.bf16.gmra.mxu1 %vm853_vm5, %v823_v38 }
 0x129   : > { %v1213_v44 = vadd.f32 %v2220_v51, %v1177_v57 }
 0x12a   : > { %v901_v63 = vpop.f32.mrf.mxu0 }
 0x12b   : > { %vm1245_vm6 = vcmp.gt.f32.partialorder %v1213_v44, 0.0  ;;  %v1281_v3 = vmul.f32 %v2226_v60, %v1213_v44  ;;  %v2238_v5 = vpop.f32.mrf.mxu3 }
 0x12c   : > { %v1000_v6 = vpop.f32.mrf.mxu1 }
 0x12d   : > { %v1313_v7 = vsel %vm1245_vm6, %v1213_v44, %v1281_v3  ;;  %v1001_v8 = vadd.f32 %v1000_v6, %v901_v63  ;;  %1610 = vmatmul.msk.bf16.gmra.mxu2 %vm853_vm5, %v2235_v1 }
 0x12e   : > { %1345 = vst [vmem:[%s2242_s13] sm:$0xff] %v1313_v7 }
 0x12f   : > { %v1178_v20 = vadd.f32 %v1099_v62, %v1001_v8 }
 0x130   : > { %v1102_v9 = vpop.f32.mrf.mxu2  ;;  %1614 = vmatmul.msk.bf16.gmra.mxu3 %vm853_vm5, %v2145_v17 }
 0x131   : > { %v1214_v13 = vadd.f32 %v2220_v51, %v1178_v20 }
 0x132   : > { %v904_v14 = vpop.f32.mrf.mxu0 }
 0x133   : > { %vm1246_vm7 = vcmp.gt.f32.partialorder %v1214_v13, 0.0  ;;  %v1282_v15 = vmul.f32 %v2226_v60, %v1214_v13  ;;  %v2249_v16 = vpop.f32.mrf.mxu3 }
 0x134   : > { %v1003_v12 = vpop.f32.mrf.mxu1 }
 0x135   : > { %v1314_v18 = vsel %vm1246_vm7, %v1214_v13, %v1282_v15  ;;  %v1004_v21 = vadd.f32 %v1003_v12, %v904_v14  ;;  %1570 = vmatmul.msk.bf16.gmra.mxu0 %vm853_vm5, %v2208_v19 }
 0x136   : > { %1346 = vst [vmem:[%s2242_s13 + $0x8] sm:$0xff] %v1314_v18 }
 0x137   : > { %v1179_v4 = vadd.f32 %v1102_v9, %v1004_v21  ;;  %1590 = vmatmul.msk.bf16.gmra.mxu1 %vm853_vm5, %v825_v47 }
 0x138   : > { %v1104_v17 = vpop.f32.mrf.mxu2 }
 0x139   : > { %v1215_v23 = vadd.f32 %v2220_v51, %v1179_v4 }
 0x13a   : > { %v906_v25 = vpop.f32.mrf.mxu0 }
 0x13b   : > { %vm1247_vm8 = vcmp.gt.f32.partialorder %v1215_v23, 0.0  ;;  %v1283_v26 = vmul.f32 %v2226_v60, %v1215_v23  ;;  %v2257_v29 = vpop.f32.mrf.mxu3 }
 0x13c   : > { %v1005_v32 = vpop.f32.mrf.mxu1 }
 0x13d   : > { %v1315_v31 = vsel %vm1247_vm8, %v1215_v23, %v1283_v26  ;;  %v1006_v27 = vadd.f32 %v1005_v32, %v906_v25  ;;  %1611 = vmatmul.msk.bf16.gmra.mxu2 %vm853_vm5, %v2175_v40 }
 0x13e   : > { %1347 = vst [vmem:[%s2242_s13 + $0x10] sm:$0xff] %v1315_v31 }
 0x13f   : > { %v1180_v59 = vadd.f32 %v1104_v17, %v1006_v27 }
 0x140   : > { %v1107_v33 = vpop.f32.mrf.mxu2  ;;  %1615 = vmatmul.msk.bf16.gmra.mxu3 %vm853_vm5, %v2159_v24  ;;  %v676_v24 = vpop.permute.xlu1 %675 }
 0x141   : > { %v1216_v34 = vadd.f32 %v2220_v51, %v1180_v59  ;;  %v804_v38 = vsel %vm768_vm3, %v2129_v58, %v676_v24 }
 0x142   : > { %v909_v35 = vpop.f32.mrf.mxu0  ;;  %v841_v28 = vsel %vm805_vm4, %v804_v38, %v767_v37 }
 0x143   : > { %vm1248_vm9 = vcmp.gt.f32.partialorder %v1216_v34, 0.0  ;;  %v1284_v36 = vmul.f32 %v2226_v60, %v1216_v34  ;;  %v2266_v39 = vpop.f32.mrf.mxu3 }
 0x144   : > { %v1008_v41 = vpop.f32.mrf.mxu1 }
 0x145   : > { %v1316_v22 = vsel %vm1248_vm9, %v1216_v34, %v1284_v36  ;;  %v1009_v10 = vadd.f32 %v1008_v41, %v909_v35  ;;  %1571 = vmatmul.msk.bf16.gmra.mxu0 %vm853_vm5, %v2235_v1 }
 0x146   : > { %1348 = vst [vmem:[%s2242_s13 + $0x18] sm:$0xff] %v1316_v22 }
 0x147   : > { %v1181_v42 = vadd.f32 %v1107_v33, %v1009_v10  ;;  %1591 = vmatmul.msk.bf16.gmra.mxu1 %vm853_vm5, %v2208_v19 }
 0x148   : > { %v1109_v43 = vpop.f32.mrf.mxu2 }
 0x149   : > { %v1217_v2 = vadd.f32 %v2220_v51, %v1181_v42 }
 0x14a   : > { %v911_v45 = vpop.f32.mrf.mxu0 }
 0x14b   : > { %vm1249_vm10 = vcmp.gt.f32.partialorder %v1217_v2, 0.0  ;;  %v1285_v30 = vmul.f32 %v2226_v60, %v1217_v2  ;;  %v2277_v46 = vpop.f32.mrf.mxu3 }
 0x14c   : > { %v1010_v47 = vpop.f32.mrf.mxu1 }
 0x14d   : > { %v1317_v11 = vsel %vm1249_vm10, %v1217_v2, %v1285_v30  ;;  %v1011_v48 = vadd.f32 %v1010_v47, %v911_v45  ;;  %1612 = vmatmul.msk.bf16.gmra.mxu2 %vm853_vm5, %v2099_v0 }
 0x14e   : > { %1349 = vst [vmem:[%s2242_s13 + $0x20] sm:$0xff] %v1317_v11 }
 0x14f   : > { %v1182_v19 = vadd.f32 %v1109_v43, %v1011_v48 }
 0x150   : > { %v1112_v49 = vpop.f32.mrf.mxu2  ;;  %1616 = vmatmul.msk.bf16.gmra.mxu3 %vm853_vm5, %v841_v28 }
 0x151   : > { %v1218_v58 = vadd.f32 %v2220_v51, %v1182_v19 }
 0x152   : > { %v914_v50 = vpop.f32.mrf.mxu0 }
 0x153   : > { %vm1250_vm11 = vcmp.gt.f32.partialorder %v1218_v58, 0.0  ;;  %v1286_v53 = vmul.f32 %v2226_v60, %v1218_v58  ;;  %v2286_v54 = vpop.f32.mrf.mxu3 }
 0x154   : > { %v1013_v56 = vpop.f32.mrf.mxu1 }
 0x155   : > { %v1318_v57 = vsel %vm1250_vm11, %v1218_v58, %v1286_v53  ;;  %v1014_v55 = vadd.f32 %v1013_v56, %v914_v50  ;;  %1572 = vmatmul.msk.bf16.gmra.mxu0 %vm853_vm5, %v2175_v40 }
 0x156   : > { %1350 = vst [vmem:[%s2242_s13 + $0x28] sm:$0xff] %v1318_v57 }
 0x157   : > { %v1183_v0 = vadd.f32 %v1112_v49, %v1014_v55  ;;  %1592 = vmatmul.msk.bf16.gmra.mxu1 %vm853_vm5, %v2235_v1 }
 0x158   : > { %v1114_v61 = vpop.f32.mrf.mxu2 }
 0x159   : > { %v1219_v62 = vadd.f32 %v2220_v51, %v1183_v0 }
 0x15a   : > { %v916_v44 = vpop.f32.mrf.mxu0 }
 0x15b   : > { %vm1251_vm12 = vcmp.gt.f32.partialorder %v1219_v62, 0.0  ;;  %v1287_v63 = vmul.f32 %v2226_v60, %v1219_v62  ;;  %v2295_v3 = vpop.f32.mrf.mxu3 }
 0x15c   : > { %v1015_v6 = vpop.f32.mrf.mxu1 }
 0x15d   : > { %v1319_v7 = vsel %vm1251_vm12, %v1219_v62, %v1287_v63  ;;  %v1016_v8 = vadd.f32 %v1015_v6, %v916_v44 }
 0x15e   : > { %1351 = vst [vmem:[%s2242_s13 + $0x30] sm:$0xff] %v1319_v7 }
 0x15f   : > { %v1184_v40 = vadd.f32 %v1114_v61, %v1016_v8 }
 0x160   : > { %v1117_v20 = vpop.f32.mrf.mxu2 }
 0x161   : > { %v1220_v9 = vadd.f32 %v2220_v51, %v1184_v40 }
 0x162   : > { %v919_v13 = vpop.f32.mrf.mxu0 }
 0x163   : > { %vm1252_vm13 = vcmp.gt.f32.partialorder %v1220_v9, 0.0  ;;  %v1288_v1 = vmul.f32 %v2226_v60, %v1220_v9  ;;  %v2300_v14 = vpop.f32.mrf.mxu3 }
 0x164   : > { %v1018_v15 = vpop.f32.mrf.mxu1 }
 0x165   : > { %v1320_v12 = vsel %vm1252_vm13, %v1220_v9, %v1288_v1  ;;  %v1019_v18 = vadd.f32 %v1018_v15, %v919_v13 }
 0x166   : > { %1352 = vst [vmem:[%s2242_s13 + $0x38] sm:$0xff] %v1320_v12 }
 0x167   : > { %v1185_v21 = vadd.f32 %v1117_v20, %v1019_v18 }
 0x168   : > { %v1119_v4 = vpop.f32.mrf.mxu2 }
 0x169   : > { %v1221_v17 = vadd.f32 %v2220_v51, %v1185_v21 }
 0x16a   : > { %v921_v23 = vpop.f32.mrf.mxu0 }
 0x16b   : > { %vm1253_vm14 = vcmp.gt.f32.partialorder %v1221_v17, 0.0  ;;  %v1289_v25 = vmul.f32 %v2226_v60, %v1221_v17  ;;  %v2305_v26 = vpop.f32.mrf.mxu3 }
 0x16c   : > { %v1020_v32 = vpop.f32.mrf.mxu1 }
 0x16d   : > { %v1321_v31 = vsel %vm1253_vm14, %v1221_v17, %v1289_v25  ;;  %v1021_v27 = vadd.f32 %v1020_v32, %v921_v23 }
 0x16e   : > { %1353 = vst [vmem:[%s2242_s13 + $0x40] sm:$0xff] %v1321_v31 }
 0x16f   : > { %v1186_v59 = vadd.f32 %v1119_v4, %v1021_v27 }
 0x170   : > { %v1122_v33 = vpop.f32.mrf.mxu2 }
 0x171   : > { %v1222_v34 = vadd.f32 %v2220_v51, %v1186_v59 }
 0x172   : > { %v924_v35 = vpop.f32.mrf.mxu0 }
 0x173   : > { %vm1254_vm15 = vcmp.gt.f32.partialorder %v1222_v34, 0.0  ;;  %v1290_v36 = vmul.f32 %v2226_v60, %v1222_v34  ;;  %v2310_v41 = vpop.f32.mrf.mxu3 }
 0x174   : > { %v1023_v22 = vpop.f32.mrf.mxu1 }
 0x175   : > { %v1322_v10 = vsel %vm1254_vm15, %v1222_v34, %v1290_v36  ;;  %v1024_v42 = vadd.f32 %v1023_v22, %v924_v35  ;;  %v1059_v22 = vadd.f32 %v2300_v14, %v2214_v52  ;;  %v1061_v14 = vadd.f32 %v2305_v26, %v2238_v5 }
 0x176   : > { %1354 = vst [vmem:[%s2242_s13 + $0x48] sm:$0xff] %v1322_v10 }
 0x177   : > { %v1187_v24 = vadd.f32 %v1122_v33, %v1024_v42 }
 0x178   : > { %v1124_v43 = vpop.f32.mrf.mxu2 }
 0x179   : > { %v1223_v2 = vadd.f32 %v2220_v51, %v1187_v24 }
 0x17a   : > { %v926_v45 = vpop.f32.mrf.mxu0 }
 0x17b   : > { %vm1255_vm0 = vcmp.gt.f32.partialorder %v1223_v2, 0.0  ;;  %v1291_v38 = vmul.f32 %v2226_v60, %v1223_v2  ;;  %v2315_v37 = vpop.f32.mrf.mxu3 }
 0x17c   : > { %v1025_v30 = vpop.f32.mrf.mxu1 }
 0x17d   : > { %v1323_v47 = vsel %vm1255_vm0, %v1223_v2, %v1291_v38  ;;  %v1026_v11 = vadd.f32 %v1025_v30, %v926_v45 }
 0x17e   : > { %1355 = vst [vmem:[%s2242_s13 + $0x50] sm:$0xff] %v1323_v47 }
 0x17f   : > { %v1188_v48 = vadd.f32 %v1124_v43, %v1026_v11 }
 0x180   : > { %v1127_v28 = vpop.f32.mrf.mxu2 }
 0x181   : > { %v1224_v19 = vadd.f32 %v2220_v51, %v1188_v48 }
 0x182   : > { %v929_v49 = vpop.f32.mrf.mxu0 }
 0x183   : > { %vm1256_vm1 = vcmp.gt.f32.partialorder %v1224_v19, 0.0  ;;  %v1292_v58 = vmul.f32 %v2226_v60, %v1224_v19  ;;  %v2320_v50 = vpop.f32.mrf.mxu3 }
 0x184   : > { %v1028_v53 = vpop.f32.mrf.mxu1 }
 0x185   : > { %v1324_v56 = vsel %vm1256_vm1, %v1224_v19, %v1292_v58  ;;  %v1029_v57 = vadd.f32 %v1028_v53, %v929_v49 }
 0x186   : > { %1356 = vst [vmem:[%s2242_s13 + $0x58] sm:$0xff] %v1324_v56 }
 0x187   : > { %v1189_v55 = vadd.f32 %v1127_v28, %v1029_v57 }
 0x188   : > { %v1129_v0 = vpop.f32.mrf.mxu2 }
 0x189   : > { %v1225_v61 = vadd.f32 %v2220_v51, %v1189_v55 }
 0x18a   : > { %v931_v62 = vpop.f32.mrf.mxu0 }
 0x18b   : > { %vm1257_vm2 = vcmp.gt.f32.partialorder %v1225_v61, 0.0  ;;  %v1293_v44 = vmul.f32 %v2226_v60, %v1225_v61  ;;  %v2325_v63 = vpop.f32.mrf.mxu3 }
 0x18c   : > { %v1030_v6 = vpop.f32.mrf.mxu1 }
 0x18d   : > { %v1325_v7 = vsel %vm1257_vm2, %v1225_v61, %v1293_v44  ;;  %v1031_v8 = vadd.f32 %v1030_v6, %v931_v62  ;;  %v1064_v44 = vadd.f32 %v2310_v41, %v2249_v16 }
 0x18e   : > { %1357 = vst [vmem:[%s2242_s13 + $0x60] sm:$0xff] %v1325_v7 }
 0x18f   : > { %v1190_v40 = vadd.f32 %v1129_v0, %v1031_v8 }
 0x190   : > { %v1132_v20 = vpop.f32.mrf.mxu2 }
 0x191   : > { %v1226_v9 = vadd.f32 %v2220_v51, %v1190_v40 }
 0x192   : > { %v934_v13 = vpop.f32.mrf.mxu0 }
 0x193   : > { %vm1258_vm3 = vcmp.gt.f32.partialorder %v1226_v9, 0.0  ;;  %v1294_v1 = vmul.f32 %v2226_v60, %v1226_v9  ;;  %v2330_v15 = vpop.f32.mrf.mxu3 }
 0x194   : > { %v1033_v12 = vpop.f32.mrf.mxu1 }
 0x195   : > { %v1326_v18 = vsel %vm1258_vm3, %v1226_v9, %v1294_v1  ;;  %v1034_v21 = vadd.f32 %v1033_v12, %v934_v13 }
 0x196   : > { %1358 = vst [vmem:[%s2242_s13 + $0x68] sm:$0xff] %v1326_v18 }
 0x197   : > { %v1191_v4 = vadd.f32 %v1132_v20, %v1034_v21 }
 0x198   : > { %v1134_v17 = vpop.f32.mrf.mxu2 }
 0x199   : > { %v1227_v23 = vadd.f32 %v2220_v51, %v1191_v4  ;;  %v1066_v4 = vadd.f32 %v2315_v37, %v2257_v29 }
 0x19a   : > { %v936_v25 = vpop.f32.mrf.mxu0 }
 0x19b   : > { %vm1259_vm4 = vcmp.gt.f32.partialorder %v1227_v23, 0.0  ;;  %v1295_v32 = vmul.f32 %v2226_v60, %v1227_v23  ;;  %v2335_v31 = vpop.f32.mrf.mxu3 }
 0x19c   : > { %v1035_v27 = vpop.f32.mrf.mxu1 }
 0x19d   : > { %v1327_v59 = vsel %vm1259_vm4, %v1227_v23, %v1295_v32  ;;  %v1036_v33 = vadd.f32 %v1035_v27, %v936_v25 }
 0x19e   : > { %1359 = vst [vmem:[%s2242_s13 + $0x70] sm:$0xff] %v1327_v59 }
 0x19f   : > { %v1192_v34 = vadd.f32 %v1134_v17, %v1036_v33 }
 0x1a0   : > { %v1137_v35 = vpop.f32.mrf.mxu2 }
 0x1a1   : > { %v1228_v36 = vadd.f32 %v2220_v51, %v1192_v34 }
 0x1a2   : > { %v939_v10 = vpop.f32.mrf.mxu0 }
 0x1a3   : > { %vm1260_vm5 = vcmp.gt.f32.partialorder %v1228_v36, 0.0  ;;  %v1296_v42 = vmul.f32 %v2226_v60, %v1228_v36  ;;  %v1157_v24 = vpop.f32.mrf.mxu3 }
 0x1a4   : > { %v1201_v43 = vadd.f32 %v1157_v24, %v1059_v22  ;;  %v1038_v2 = vpop.f32.mrf.mxu1 }
 0x1a5   : > { %v1328_v45 = vsel %vm1260_vm5, %v1228_v36, %v1296_v42  ;;  %v1039_v38 = vadd.f32 %v1038_v2, %v939_v10  ;;  %v1069_v10 = vadd.f32 %v2320_v50, %v2266_v39 }
 0x1a6   : > { %1360 = vst [vmem:[%s2242_s13 + $0x78] sm:$0xff] %v1328_v45  ;;  %v1237_v30 = vadd.f32 %v2220_v51, %v1201_v43 }
 0x1a7   : > { %v1193_v47 = vadd.f32 %v1137_v35, %v1039_v38 }
 0x1a8   : > { %vm1269_vm6 = vcmp.gt.f32.partialorder %v1237_v30, 0.0  ;;  %v1305_v11 = vmul.f32 %v2226_v60, %v1237_v30  ;;  %v1139_v48 = vpop.f32.mrf.mxu2 }
 0x1a9   : > { %v1229_v52 = vadd.f32 %v2220_v51, %v1193_v47 }
 0x1aa   : > { %v1337_v28 = vsel %vm1269_vm6, %v1237_v30, %v1305_v11  ;;  %v941_v19 = vpop.f32.mrf.mxu0 }
 0x1ab   : > { %1369 = vst [vmem:[%s2242_s13 + $0xc0] sm:$0xff] %v1337_v28  ;;  %vm1261_vm7 = vcmp.gt.f32.partialorder %v1229_v52, 0.0  ;;  %v1297_v49 = vmul.f32 %v2226_v60, %v1229_v52  ;;  %v1159_v58 = vpop.f32.mrf.mxu3 }
 0x1ac   : > { %v1202_v53 = vadd.f32 %v1159_v58, %v1061_v14  ;;  %v1040_v56 = vpop.f32.mrf.mxu1 }
 0x1ad   : > { %v1329_v57 = vsel %vm1261_vm7, %v1229_v52, %v1297_v49  ;;  %v1041_v55 = vadd.f32 %v1040_v56, %v941_v19  ;;  %v1071_v52 = vadd.f32 %v2325_v63, %v2277_v46 }
 0x1ae   : > { %1361 = vst [vmem:[%s2242_s13 + $0x80] sm:$0xff] %v1329_v57  ;;  %v1238_v0 = vadd.f32 %v2220_v51, %v1202_v53 }
 0x1af   : > { %v1194_v61 = vadd.f32 %v1139_v48, %v1041_v55 }
 0x1b0   : > { %vm1270_vm8 = vcmp.gt.f32.partialorder %v1238_v0, 0.0  ;;  %v1306_v5 = vmul.f32 %v2226_v60, %v1238_v0  ;;  %v1142_v26 = vpop.f32.mrf.mxu2 }
 0x1b1   : > { %v1230_v62 = vadd.f32 %v2220_v51, %v1194_v61 }
 0x1b2   : > { %v1338_v6 = vsel %vm1270_vm8, %v1238_v0, %v1306_v5  ;;  %v944_v7 = vpop.f32.mrf.mxu0  ;;  %v1074_v5 = vadd.f32 %v2330_v15, %v2286_v54 }
 0x1b3   : > { %1370 = vst [vmem:[%s2242_s13 + $0xc8] sm:$0xff] %v1338_v6  ;;  %vm1262_vm9 = vcmp.gt.f32.partialorder %v1230_v62, 0.0  ;;  %v1298_v8 = vmul.f32 %v2226_v60, %v1230_v62  ;;  %v1162_v40 = vpop.f32.mrf.mxu3 }
 0x1b4   : > { %v1203_v20 = vadd.f32 %v1162_v40, %v1064_v44  ;;  %v1043_v9 = vpop.f32.mrf.mxu1 }
 0x1b5   : > { %v1330_v13 = vsel %vm1262_vm9, %v1230_v62, %v1298_v8  ;;  %v1044_v1 = vadd.f32 %v1043_v9, %v944_v7 }
 0x1b6   : > { %1362 = vst [vmem:[%s2242_s13 + $0x88] sm:$0xff] %v1330_v13  ;;  %v1239_v12 = vadd.f32 %v2220_v51, %v1203_v20 }
 0x1b7   : > { %v1195_v18 = vadd.f32 %v1142_v26, %v1044_v1 }
 0x1b8   : > { %vm1271_vm10 = vcmp.gt.f32.partialorder %v1239_v12, 0.0  ;;  %v1307_v16 = vmul.f32 %v2226_v60, %v1239_v12  ;;  %v1144_v41 = vpop.f32.mrf.mxu2 }
 0x1b9   : > { %v1231_v21 = vadd.f32 %v2220_v51, %v1195_v18 }
 0x1ba   : > { %v1339_v17 = vsel %vm1271_vm10, %v1239_v12, %v1307_v16  ;;  %v946_v23 = vpop.f32.mrf.mxu0  ;;  %v1076_v12 = vadd.f32 %v2335_v31, %v2295_v3 }
 0x1bb   : > { %1371 = vst [vmem:[%s2242_s13 + $0xd0] sm:$0xff] %v1339_v17  ;;  %vm1263_vm11 = vcmp.gt.f32.partialorder %v1231_v21, 0.0  ;;  %v1299_v25 = vmul.f32 %v2226_v60, %v1231_v21  ;;  %v1164_v32 = vpop.f32.mrf.mxu3 }
 0x1bc   : > { %v1204_v27 = vadd.f32 %v1164_v32, %v1066_v4  ;;  %v1045_v59 = vpop.f32.mrf.mxu1 }
 0x1bd   : > { %v1331_v33 = vsel %vm1263_vm11, %v1231_v21, %v1299_v25  ;;  %v1046_v34 = vadd.f32 %v1045_v59, %v946_v23 }
 0x1be   : > { %1363 = vst [vmem:[%s2242_s13 + $0x90] sm:$0xff] %v1331_v33  ;;  %v1240_v35 = vadd.f32 %v2220_v51, %v1204_v27 }
 0x1bf   : > { %v1196_v36 = vadd.f32 %v1144_v41, %v1046_v34 }
 0x1c0   : > { %vm1272_vm12 = vcmp.gt.f32.partialorder %v1240_v35, 0.0  ;;  %v1308_v29 = vmul.f32 %v2226_v60, %v1240_v35  ;;  %v1147_v37 = vpop.f32.mrf.mxu2 }
 0x1c1   : > { %v1232_v22 = vadd.f32 %v2220_v51, %v1196_v36 }
 0x1c2   : > { %v1340_v42 = vsel %vm1272_vm12, %v1240_v35, %v1308_v29  ;;  %v949_v24 = vpop.f32.mrf.mxu0 }
 0x1c3   : > { %1372 = vst [vmem:[%s2242_s13 + $0xd8] sm:$0xff] %v1340_v42  ;;  %vm1264_vm13 = vcmp.gt.f32.partialorder %v1232_v22, 0.0  ;;  %v1300_v43 = vmul.f32 %v2226_v60, %v1232_v22  ;;  %v1167_v2 = vpop.f32.mrf.mxu3 }
 0x1c4   : > { %v1205_v45 = vadd.f32 %v1167_v2, %v1069_v10  ;;  %v1048_v38 = vpop.f32.mrf.mxu1 }
 0x1c5   : > { %v1332_v30 = vsel %vm1264_vm13, %v1232_v22, %v1300_v43  ;;  %v1049_v47 = vadd.f32 %v1048_v38, %v949_v24 }
 0x1c6   : > { %1364 = vst [vmem:[%s2242_s13 + $0x98] sm:$0xff] %v1332_v30  ;;  %v1241_v11 = vadd.f32 %v2220_v51, %v1205_v45 }
 0x1c7   : > { %v1197_v48 = vadd.f32 %v1147_v37, %v1049_v47 }
 0x1c8   : > { %vm1273_vm14 = vcmp.gt.f32.partialorder %v1241_v11, 0.0  ;;  %v1309_v39 = vmul.f32 %v2226_v60, %v1241_v11  ;;  %v1149_v28 = vpop.f32.mrf.mxu2 }
 0x1c9   : > { %v1233_v50 = vadd.f32 %v2220_v51, %v1197_v48 }
 0x1ca   : > { %v1341_v14 = vsel %vm1273_vm14, %v1241_v11, %v1309_v39  ;;  %v951_v19 = vpop.f32.mrf.mxu0 }
 0x1cb   : > { %1373 = vst [vmem:[%s2242_s13 + $0xe0] sm:$0xff] %v1341_v14  ;;  %vm1265_vm15 = vcmp.gt.f32.partialorder %v1233_v50, 0.0  ;;  %v1301_v49 = vmul.f32 %v2226_v60, %v1233_v50  ;;  %v1169_v58 = vpop.f32.mrf.mxu3 }
 0x1cc   : > { %v1206_v53 = vadd.f32 %v1169_v58, %v1071_v52  ;;  %v1050_v56 = vpop.f32.mrf.mxu1 }
 0x1cd   : > { %v1333_v57 = vsel %vm1265_vm15, %v1233_v50, %v1301_v49  ;;  %v1051_v55 = vadd.f32 %v1050_v56, %v951_v19 }
 0x1ce   : > { %1365 = vst [vmem:[%s2242_s13 + $0xa0] sm:$0xff] %v1333_v57  ;;  %v1242_v0 = vadd.f32 %v2220_v51, %v1206_v53 }
 0x1cf   : > { %v1198_v61 = vadd.f32 %v1149_v28, %v1051_v55 }
 0x1d0   : > { %vm1274_vm0 = vcmp.gt.f32.partialorder %v1242_v0, 0.0  ;;  %v1310_v46 = vmul.f32 %v2226_v60, %v1242_v0  ;;  %v1152_v7 = vpop.f32.mrf.mxu2 }
 0x1d1   : > { %v1234_v63 = vadd.f32 %v2220_v51, %v1198_v61 }
 0x1d2   : > { %v1342_v26 = vsel %vm1274_vm0, %v1242_v0, %v1310_v46  ;;  %v954_v62 = vpop.f32.mrf.mxu0 }
 0x1d3   : > { %1374 = vst [vmem:[%s2242_s13 + $0xe8] sm:$0xff] %v1342_v26  ;;  %vm1266_vm1 = vcmp.gt.f32.partialorder %v1234_v63, 0.0  ;;  %v1302_v44 = vmul.f32 %v2226_v60, %v1234_v63  ;;  %v1172_v6 = vpop.f32.mrf.mxu3 }
 0x1d4   : > { %v1207_v8 = vadd.f32 %v1172_v6, %v1074_v5  ;;  %v1053_v40 = vpop.f32.mrf.mxu1 }
 0x1d5   : > { %v1334_v20 = vsel %vm1266_vm1, %v1234_v63, %v1302_v44  ;;  %v1054_v9 = vadd.f32 %v1053_v40, %v954_v62 }
 0x1d6   : > { %1366 = vst [vmem:[%s2242_s13 + $0xa8] sm:$0xff] %v1334_v20  ;;  %v1243_v13 = vadd.f32 %v2220_v51, %v1207_v8 }
 0x1d7   : > { %v1199_v1 = vadd.f32 %v1152_v7, %v1054_v9 }
 0x1d8   : > { %vm1275_vm2 = vcmp.gt.f32.partialorder %v1243_v13, 0.0  ;;  %v1311_v54 = vmul.f32 %v2226_v60, %v1243_v13  ;;  %v1154_v32 = vpop.f32.mrf.mxu2 }
 0x1d9   : > { %v1235_v15 = vadd.f32 %v2220_v51, %v1199_v1 }
 0x1da   : > { %v1343_v18 = vsel %vm1275_vm2, %v1243_v13, %v1311_v54  ;;  %v956_v21 = vpop.f32.mrf.mxu0 }
 0x1db   : > { %1375 = vst [vmem:[%s2242_s13 + $0xf0] sm:$0xff] %v1343_v18  ;;  %vm1267_vm3 = vcmp.gt.f32.partialorder %v1235_v15, 0.0  ;;  %v1303_v16 = vmul.f32 %v2226_v60, %v1235_v15  ;;  %v1174_v41 = vpop.f32.mrf.mxu3 }
 0x1dc   : > { %v1208_v4 = vadd.f32 %v1174_v41, %v1076_v12  ;;  %v1055_v17 = vpop.f32.mrf.mxu1 }
 0x1dd   : > { %v1335_v23 = vsel %vm1267_vm3, %v1235_v15, %v1303_v16  ;;  %v1056_v25 = vadd.f32 %v1055_v17, %v956_v21 }
 0x1de   : > { %1367 = vst [vmem:[%s2242_s13 + $0xb0] sm:$0xff] %v1335_v23  ;;  %v1244_v27 = vadd.f32 %v2220_v51, %v1208_v4 }
 0x1df   : > { %v1200_v3 = vadd.f32 %v1154_v32, %v1056_v25 }
 0x1e0   : > { %vm1276_vm4 = vcmp.gt.f32.partialorder %v1244_v27, 0.0  ;;  %v1312_v31 = vmul.f32 %v2226_v60, %v1244_v27 }
 0x1e1   : > { %v1236_v59 = vadd.f32 %v2220_v51, %v1200_v3 }
 0x1e2   : > { %v1344_v33 = vsel %vm1276_vm4, %v1244_v27, %v1312_v31 }
 0x1e3   : > { %1376 = vst [vmem:[%s2242_s13 + $0xf8] sm:$0xff] %v1344_v33  ;;  %vm1268_vm5 = vcmp.gt.f32.partialorder %v1236_v59, 0.0  ;;  %v1304_v34 = vmul.f32 %v2226_v60, %v1236_v59 }
 0x1e5   : > { %v1336_v35 = vsel %vm1268_vm5, %v1236_v59, %v1304_v34 }
 0x1e6   : > { %1368 = vst [vmem:[%s2242_s13 + $0xb8] sm:$0xff] %v1336_v35 }
 0x1e7   : > { %1735 = shalt.err (!%p1732_p5)
}
 0x1e8   : > { %s1790_s6 = smov 128  }
 0x1e9   : > { %1648 = dma.vmem_to_hbm [thread:$0]  (%p1856_p4), %s1394_s18, 4096, %s1396_s26, %s1378_s29, %s1790_s6, %s1790_s6, %s1788_s8  }
 0x1ea PF: > { %p1654_p6 = scmp.ge.s32.totalorder %s1786_s20, 2  ;;  %s1410_s13 = sand.u32 1, %s1766_s15  }
 0x1eb   : > { %s1411_s14 = scalar_lea.sflag [#allocation3], %s1410_s13 }
 0x1ec   : > { %p1651_p7 = pnand %p1654_p6, %p1863_p8 }
 0x1ee   : > { %p1652_p9 = pneg %p1651_p7 }
 0x1f0   : > { %1761 = dma.done.wait (%p1652_p9), %s1411_s14, 4096  }
 0x1f1   : > { %1763 = vsyncadd (%p1652_p9), %s1411_s14, 4294963200  ;;  %s17_s20 = sadd.s32 1, %s1786_s20   ;;  %s2452_s15 = smov %s1770_s16 }
 0x1f2   : > { %p14_p10 = scmp.ge.s32.totalorder %s17_s20, 4   ;;  %s2453_s16 = smov %s1774_s17 }
 0x1f3   : > { %s2454_s17 = smov %s1869_s28  ;;  %s2455_s18 = smov %s1782_s19 }
 0x1f4   : > { %s2456_s19 = smov %s2458_s23  ;;  %16 = sbr.rel (!%p14_p10) target bundleno = 4 (0x4), region = 71 }
 0x1f9   :  { %1417 = vsyncpa [#allocation3], 1 }
 0x1fa   :  { %1419 = vsyncpa [#allocation3 + $0x1], 1 }

</bundles_post_ra>
